<compile_context>
chip_gen: v7x
topology: tpu7x:2x2x1
jax: 0.10.0
libtpu: 0.0.40
codegen_flags: <defaults>
</compile_context>

<pallas_src>
import functools

import jax
import jax.numpy as jnp
from jax.experimental import pallas as pl
from jax.experimental.pallas import tpu as pltpu


def _round_up(x, m):
    return (x + m - 1) // m * m


def _pick_block_rows(npad):
    """Largest power-of-two row block whose ~8 live (TM, Npad) f32/i32
    temporaries (S, vals, sparse, iota, masks, double-buffered out) stay
    under a ~20 MiB budget -> safe on v7x's 64 MiB VMEM as well."""
    budget = 20 * 1024 * 1024
    tm_cap = max(8, budget // (32 * npad))
    tm = 8
    while tm * 2 <= min(tm_cap, npad, 512):
        tm *= 2
    return tm


# ---------------------------------------------------------------------------
# Kernel 1: e = L2-normalize(MLP(x)) for one row block
# ---------------------------------------------------------------------------
def _embed_kernel(x_ref, w1_ref, b1_ref, w2_ref, b2_ref, e_ref, *, mlp_act):
    x = x_ref[...]
    # internal_forward: Linear -> act -> Linear (no act on last layer)
    h = jnp.dot(x, w1_ref[...], preferred_element_type=jnp.float32) + b1_ref[...]
    if mlp_act == "relu":
        h = jnp.maximum(h, 0.0)
    elif mlp_act == "tanh":
        h = jnp.tanh(h)
    e = jnp.dot(h, w2_ref[...], preferred_element_type=jnp.float32) + b2_ref[...]
    # F.normalize(e, dim=1, p=2) == e / max(||e||, 1e-12); implemented as a
    # multiply by rsqrt (EUP slot) instead of a full-tile VPU divide.
    sumsq = jnp.sum(e * e, axis=1, keepdims=True)
    e_ref[...] = e * jax.lax.rsqrt(jnp.maximum(sumsq, 1e-24))


# ---------------------------------------------------------------------------
# Kernel 2: one (TM, Npad) row block of the sparsified similarity graph
# ---------------------------------------------------------------------------
def _graph_kernel(e_blk_ref, e_all_ref, out_ref, *, n_valid, topk, i_scale):
    eb = e_blk_ref[...]        # (TM, D)   rows of this block
    ea = e_all_ref[...]        # (Npad, D) all rows (VMEM-resident across grid)

    # S_blk = e_blk @ e_all.T  (contract the feature axis of both operands)
    s = jax.lax.dot_general(eb, ea, (((1,), (1,)), ((), ())),
                            preferred_element_type=jnp.float32)   # (TM, Npad)

    npad = s.shape[1]
    col = jax.lax.broadcasted_iota(jnp.int32, s.shape, 1)
    neg = jnp.float32(-3.0e38)

    # Padded columns (>= n_valid) must never be selected by top-k.
    vals = jnp.where(col < n_valid, s, neg)

    # top-(k+1) per row by iterative max-knockout, accumulating the sparse
    # result directly (no mask array, no final full-tile multiply).
    sparse = jnp.zeros_like(s)
    for _ in range(topk):
        row_max = jnp.max(vals, axis=1, keepdims=True)                     # reduce 1
        is_max = vals == row_max
        # exact torch.topk / lax.top_k-style lowest-index tie-break
        first = jnp.min(jnp.where(is_max, col, npad), axis=1, keepdims=True)  # reduce 2
        hit = col == first
        sparse = sparse + jnp.where(hit, s, 0.0)
        vals = jnp.where(hit, neg, vals)

    # apply_non_linearity 'elu': F.elu(x*i - i) + 1 (applied to every entry,
    # including the zeroed ones, exactly as in the PyTorch module).
    y = sparse * i_scale - i_scale
    out_ref[...] = jnp.where(y > 0.0, y, jnp.exp(y) - 1.0) + 1.0


# ---------------------------------------------------------------------------
# Wrapper
# ---------------------------------------------------------------------------
def mlp_graph_forward(x, w1, b1, w2, b2, *, k, i_scale, mlp_act="relu",
                      block_rows=None):
    n, isize = x.shape
    hsize = w1.shape[1]
    osize = w2.shape[1]

    # Lane-dense padding (multiples of 128 on every contracted / last dim).
    ip = _round_up(isize, 128)
    hp = _round_up(hsize, 128)
    dp = _round_up(osize, 128)
    np0 = _round_up(n, 128)

    tm = _pick_block_rows(np0) if block_rows is None else int(block_rows)
    npad = _round_up(np0, tm)
    grid = (npad // tm,)

    f32 = jnp.float32
    xp = jnp.pad(x.astype(f32), ((0, npad - n), (0, ip - isize)))
    w1p = jnp.pad(w1.astype(f32), ((0, ip - isize), (0, hp - hsize)))
    b1p = jnp.pad(b1.astype(f32), ((0, 0), (0, hp - hsize)))
    w2p = jnp.pad(w2.astype(f32), ((0, hp - hsize), (0, dp - osize)))
    b2p = jnp.pad(b2.astype(f32), ((0, 0), (0, dp - osize)))

    cparams = pltpu.CompilerParams(
        dimension_semantics=("parallel",),        # shard row blocks across TCs
        vmem_limit_bytes=48 * 1024 * 1024,        # explicit; fits v7x's 64 MiB
    )

    # Pass 1: normalized embeddings for all (padded) rows. Weights/biases stay
    # VMEM-resident (constant index_map => no re-fetch across grid steps).
    e = pl.pallas_call(
        functools.partial(_embed_kernel, mlp_act=mlp_act),
        out_shape=jax.ShapeDtypeStruct((npad, dp), f32),
        grid=grid,
        in_specs=[
            pl.BlockSpec((tm, ip), lambda i: (i, 0)),
            pl.BlockSpec((ip, hp), lambda i: (0, 0)),
            pl.BlockSpec((1, hp), lambda i: (0, 0)),
            pl.BlockSpec((hp, dp), lambda i: (0, 0)),
            pl.BlockSpec((1, dp), lambda i: (0, 0)),
        ],
        out_specs=pl.BlockSpec((tm, dp), lambda i: (i, 0)),
        compiler_params=cparams,
    )(xp, w1p, b1p, w2p, b2p)

    # Pass 2: dense sparsified graph, one (tm, npad) output row block per step.
    # `e` is passed twice: once tiled by rows, once full (stays resident).
    out = pl.pallas_call(
        functools.partial(_graph_kernel, n_valid=n, topk=k + 1,
                          i_scale=float(i_scale)),
        out_shape=jax.ShapeDtypeStruct((npad, npad), f32),
        grid=grid,
        in_specs=[
            pl.BlockSpec((tm, dp), lambda i: (i, 0)),
            pl.BlockSpec((npad, dp), lambda i: (0, 0)),
        ],
        out_specs=pl.BlockSpec((tm, npad), lambda i: (i, 0)),
        compiler_params=cparams,
    )(e, e)

    return out[:n, :n]


# ---------------------------------------------------------------------------
# Pure-JAX reference (mirrors the module semantics)
# ---------------------------------------------------------------------------
def _reference(x, w1, b1, w2, b2, *, k, i_scale):
    h = jnp.maximum(x @ w1 + b1, 0.0)
    e = h @ w2 + b2
    e = e * jax.lax.rsqrt(jnp.maximum(jnp.sum(e * e, axis=1, keepdims=True), 1e-24))
    s = e @ e.T
    _, idx = jax.lax.top_k(s, k + 1)
    mask = jnp.zeros_like(s).at[jnp.arange(s.shape[0])[:, None], idx].set(1.0)
    sp = s * mask
    y = sp * i_scale - i_scale
    return jnp.where(y > 0.0, y, jnp.exp(y) - 1.0) + 1.0


if __name__ == "__main__":
    # Module hyperparameters (nlayers=2, isize != osize -> generic MLP path).
    N, ISIZE, HSIZE, OSIZE = 8, 16, 32, 8
    K = 3                 # self.k
    I_SCALE = 6.0         # self.i (elu slope)
    # TODO(synk): mlp_knn_init's Adam/KNN pre-training is a training-time
    # procedure, not part of the forward kernel; weights are synthetic here.

    key = jax.random.PRNGKey(0)
    kx, kw1, kb1, kw2, kb2 = jax.random.split(key, 5)

    x = jax.random.normal(kx, (N, ISIZE), dtype=jnp.float32)
    # PyTorch Linear default init: U(-1/sqrt(fan_in), 1/sqrt(fan_in)).
    lim1 = 1.0 / (ISIZE ** 0.5)
    lim2 = 1.0 / (HSIZE ** 0.5)
    w1 = jax.random.uniform(kw1, (ISIZE, HSIZE), jnp.float32, -lim1, lim1)
    b1 = jax.random.uniform(kb1, (1, HSIZE), jnp.float32, -lim1, lim1)
    w2 = jax.random.uniform(kw2, (HSIZE, OSIZE), jnp.float32, -lim2, lim2)
    b2 = jax.random.uniform(kb2, (1, OSIZE), jnp.float32, -lim2, lim2)

    # block_rows=64 forces a 2-step row grid over the 128-padded rows so the
    # gridded / pipelined / "parallel" path is exercised even at test size.
    out = mlp_graph_forward(x, w1, b1, w2, b2, k=K, i_scale=I_SCALE,
                            block_rows=64)
    out = jax.block_until_ready(out)

    ref = _reference(x, w1, b1, w2, b2, k=K, i_scale=I_SCALE)
    assert out.shape == (N, N)
    assert jnp.allclose(out, ref, atol=2e-5, rtol=2e-5)

    print("KERNEL_OK")
</pallas_src>

<mosaic_0001>
module attributes {stable_mosaic.version = 11 : i64} {
  func.func @_embed_kernel(%arg0: i32, %arg1: memref<64x128xf32, #tpu.memory_space<vmem>>, %arg2: memref<128x128xf32, #tpu.memory_space<vmem>>, %arg3: memref<1x128xf32, #tpu.memory_space<vmem>>, %arg4: memref<128x128xf32, #tpu.memory_space<vmem>>, %arg5: memref<1x128xf32, #tpu.memory_space<vmem>>, %arg6: memref<64x128xf32, #tpu.memory_space<vmem>>) attributes {dimension_semantics = [#tpu.dimension_semantics<parallel>], iteration_bounds = array<i64: 2>, scalar_prefetch = 0 : i64, scratch_operands = 0 : i64, tpu.core_type = #tpu.core_type<tc>, window_params = [{transform_indices = @transform_0, window_bounds = array<i64: 64, 128>}, {pipeline_mode = #tpu.pipeline_mode<synchronous>, transform_indices = @transform_1, window_bounds = array<i64: 128, 128>}, {pipeline_mode = #tpu.pipeline_mode<synchronous>, transform_indices = @transform_2, window_bounds = array<i64: 1, 128>}, {pipeline_mode = #tpu.pipeline_mode<synchronous>, transform_indices = @transform_3, window_bounds = array<i64: 128, 128>}, {pipeline_mode = #tpu.pipeline_mode<synchronous>, transform_indices = @transform_4, window_bounds = array<i64: 1, 128>}, {transform_indices = @transform_5, window_bounds = array<i64: 64, 128>}]} {
    %c0 = arith.constant 0 : index
    %c0_0 = arith.constant 0 : index
    %0 = vector.load %arg1[%c0, %c0_0] : memref<64x128xf32, #tpu.memory_space<vmem>>, vector<64x128xf32>
    %c0_1 = arith.constant 0 : index
    %c0_2 = arith.constant 0 : index
    %1 = vector.load %arg2[%c0_1, %c0_2] : memref<128x128xf32, #tpu.memory_space<vmem>>, vector<128x128xf32>
    %cst = arith.constant dense<0.000000e+00> : vector<64x128xf32>
    %2 = tpu.matmul %0, %1, %cst {dimension_numbers = #tpu.dot_dimension_numbers<[1], [0], [0], [1], [0, 0, 1, 1], [], []>} : vector<64x128xf32>, vector<128x128xf32>, vector<64x128xf32> -> vector<64x128xf32>
    %c0_3 = arith.constant 0 : index
    %c0_4 = arith.constant 0 : index
    %3 = vector.load %arg3[%c0_3, %c0_4] : memref<1x128xf32, #tpu.memory_space<vmem>>, vector<1x128xf32>
    %4 = vector.broadcast %3 : vector<1x128xf32> to vector<64x128xf32>
    %5 = arith.addf %2, %4 : vector<64x128xf32>
    %cst_5 = arith.constant 0.000000e+00 : f32
    %6 = vector.broadcast %cst_5 : f32 to vector<64x128xf32>
    %7 = arith.maximumf %5, %6 : vector<64x128xf32>
    %c0_6 = arith.constant 0 : index
    %c0_7 = arith.constant 0 : index
    %8 = vector.load %arg4[%c0_6, %c0_7] : memref<128x128xf32, #tpu.memory_space<vmem>>, vector<128x128xf32>
    %cst_8 = arith.constant dense<0.000000e+00> : vector<64x128xf32>
    %9 = tpu.matmul %7, %8, %cst_8 {dimension_numbers = #tpu.dot_dimension_numbers<[1], [0], [0], [1], [0, 0, 1, 1], [], []>} : vector<64x128xf32>, vector<128x128xf32>, vector<64x128xf32> -> vector<64x128xf32>
    %c0_9 = arith.constant 0 : index
    %c0_10 = arith.constant 0 : index
    %10 = vector.load %arg5[%c0_9, %c0_10] : memref<1x128xf32, #tpu.memory_space<vmem>>, vector<1x128xf32>
    %11 = vector.broadcast %10 : vector<1x128xf32> to vector<64x128xf32>
    %12 = arith.addf %9, %11 : vector<64x128xf32>
    %13 = arith.mulf %12, %12 : vector<64x128xf32>
    %cst_11 = arith.constant dense<0.000000e+00> : vector<64xf32>
    %14 = vector.multi_reduction <add>, %13, %cst_11 [1] : vector<64x128xf32> to vector<64xf32>
    %15 = vector.shape_cast %14 : vector<64xf32> to vector<64x1xf32>
    %cst_12 = arith.constant 1.000000e-24 : f32
    %16 = vector.broadcast %cst_12 : f32 to vector<64x1xf32>
    %17 = arith.maximumf %15, %16 : vector<64x1xf32>
    %18 = math.rsqrt %17 : vector<64x1xf32>
    %19 = vector.broadcast %18 : vector<64x1xf32> to vector<64x128xf32>
    %20 = arith.mulf %12, %19 : vector<64x128xf32>
    %c0_13 = arith.constant 0 : index
    %c0_14 = arith.constant 0 : index
    %21 = vector.load %arg6[%c0_13, %c0_14] : memref<64x128xf32, #tpu.memory_space<vmem>>, vector<64x128xf32>
    tpu.vector_store %arg6[%c0_13, %c0_14], %20 {strides = array<i32>} : memref<64x128xf32, #tpu.memory_space<vmem>>, vector<64x128xf32>,
    return
  }
  func.func @transform_0(%arg0: i32) -> (i32, i32) {
    %c0_i32 = arith.constant 0 : i32
    %c0_i32_0 = arith.constant 0 : i32
    return %arg0, %c0_i32 : i32, i32
  }
  func.func @transform_1(%arg0: i32) -> (i32, i32) {
    %c0_i32 = arith.constant 0 : i32
    %c0_i32_0 = arith.constant 0 : i32
    %c0_i32_1 = arith.constant 0 : i32
    return %c0_i32, %c0_i32_0 : i32, i32
  }
  func.func @transform_2(%arg0: i32) -> (i32, i32) {
    %c0_i32 = arith.constant 0 : i32
    %c0_i32_0 = arith.constant 0 : i32
    %c0_i32_1 = arith.constant 0 : i32
    return %c0_i32, %c0_i32_0 : i32, i32
  }
  func.func @transform_3(%arg0: i32) -> (i32, i32) {
    %c0_i32 = arith.constant 0 : i32
    %c0_i32_0 = arith.constant 0 : i32
    %c0_i32_1 = arith.constant 0 : i32
    return %c0_i32, %c0_i32_0 : i32, i32
  }
  func.func @transform_4(%arg0: i32) -> (i32, i32) {
    %c0_i32 = arith.constant 0 : i32
    %c0_i32_0 = arith.constant 0 : i32
    %c0_i32_1 = arith.constant 0 : i32
    return %c0_i32, %c0_i32_0 : i32, i32
  }
  func.func @transform_5(%arg0: i32) -> (i32, i32) {
    %c0_i32 = arith.constant 0 : i32
    %c0_i32_0 = arith.constant 0 : i32
    return %arg0, %c0_i32 : i32, i32
  }
}

</mosaic_0001>

<bundles_post_ra>
// kernel: tpu_custom_call.1
= control target key start
LH: loop header
LB: loop body
LE: loop exit
PB: predicated region body
PF: predicated region fallthrough
CT: control target
= control target key end

     0   :  { %10 = vsyncpa [#allocation3], 0  ;;  %s1476_s0 = inlined_call_operand.hbm [shape: f32[128,128], index: 0, kind: input, shape index: {}]   ;;  %s1477_s1 = inlined_call_operand.hbm [shape: f32[128,128], index: 1, kind: input, shape index: {}]   ;;  %s1478_s2 = inlined_call_operand.vmem [shape: f32[1,128], index: 2, kind: input, shape index: {}]   ;;  %s1479_s3 = inlined_call_operand.hbm [shape: f32[128,128], index: 3, kind: input, shape index: {}]   ;;  %s1480_s4 = inlined_call_operand.vmem [shape: f32[1,128], index: 4, kind: input, shape index: {}]   ;;  %s1481_s5 = inlined_call_operand.hbm [shape: f32[128,128], index: 5, kind: output, shape index: {}]  }
   0x1   :  { %12 = vsyncpa [#allocation3 + $0x1], 0 }
   0x2   :  { %13 = vsyncpa [#allocation6], 0 }
   0x3   :  { %14 = vsyncpa [#allocation4], 0 }
   0x4   :  { %16 = vsyncpa [#allocation4 + $0x1], 0  ;;  %s1213_s18 = smov 0   ;;  %s1215_s19 = smov 0  }
   0x5   :  { %s1217_s20 = smov 0   ;;  %s1219_s21 = smov 0  }
   0x6 LB: > { %s1234_s22 = sadd.s32 4294967295, %s1173_s21   ;;  %s708_s23 = sadd.s32 4294967294, %s1173_s21   ;;  %s1173_s21 = sphi %s1219_s21, %s1501_s21   ;;  %s1169_s20 = sphi %s1217_s20, %s1500_s20   ;;  %s1165_s19 = sphi %s1215_s19, %s1499_s19   ;;  %s1161_s18 = sphi %s1213_s18, %s1498_s18  }
   0x7   : > { %p42_p0 = scmp.ne.s32.totalorder %s1165_s19, %s1161_s18  ;;  %p1482_p1 = scmp.eq.s32.totalorder %s1234_s22, 0 }
   0x8   : > { %p156_p3 = scmp.eq.s32.totalorder %s708_s23, 1  ;;  %p709_p5 = scmp.ge.s32.totalorder %s1173_s21, 1 }
   0x9   : > { %p1243_p4 = por %p1482_p1, %p42_p0  ;;  %p163_p7 = scmp.lt.s32.totalorder %s1173_s21, 3 }
   0xa   : > { %p1248_p6 = por %p156_p3, %p42_p0  ;;  %s1175_s27 = smov [#allocation5]  }
   0xb   : > { %s1485_s24 = scalar_select %p1243_p4, 1, 0 }
   0xc   : > { %s1486_s25 = scalar_select %p1248_p6, 1, 0 }
   0xd   : > { %p1253_p8 = pnand %p709_p5, %p163_p7  ;;  %s175_s28 = sshll.u32 %s1175_s27, 4  ;;  %s1257_s28 = int_to_ptr.vmem [resolvable:$true] %s175_s28 }
   0xe   : > { %s1176_s30 = smov [#allocation7]   ;;  %s1017_s9 = scalar_lea.hbm %s1477_s1, 2048 }
   0xf   : > { %p942_p9 = pneg %p1253_p8  ;;  %s191_s6 = sshll.u32 %s1176_s30, 4  ;;  %s1268_s6 = int_to_ptr.vmem [resolvable:$true] %s191_s6 }
  0x10   : > { %p1018_p12 = scmp.ne.s32.totalorder %s1477_s1, %s1017_s9  ;;  %p1024_p5 = scmp.lt.u32.totalorder %s1017_s9, %s1477_s1 }
  0x11   : > { %p1264_p11 = pnand %p942_p9, %p1482_p1 }
  0x13   : > { %p1019_p13 = pneg %p1264_p11 }
  0x15   : > { %p1020_p0 = pnand %p1019_p13, %p1018_p12 }
  0x17   : > { %p1021_p3 = pneg %p1020_p0 }
  0x19   : > { %p1026_p7 = pnand %p1024_p5, %p1021_p3 }
  0x1b   : > { %1029 = shalt.err (!%p1026_p7)
}
  0x1c   : > { %s1030_s14 = scalar_lea.vmem %s1257_s28, 2048  ;;  %p1038_p2 = scmp.lt.s32.totalorder %s1257_s28, %s1257_s28 }
  0x1d   : > { %p1031_p9 = scmp.ne.s32.totalorder %s1257_s28, %s1030_s14  ;;  %p1039_p12 = scmp.lt.s32.totalorder %s1030_s14, %s1030_s14 }
  0x1f   : > { %p1033_p10 = pnand %p1031_p9, %p1019_p13  ;;  %p1040_p0 = por %p1039_p12, %p1038_p2 }
  0x21   : > { %p1034_p1 = pneg %p1033_p10 }
  0x23   : > { %p1041_p6 = pnand %p1040_p0, %p1034_p1 }
  0x25   : > { %1044 = shalt.err (!%p1041_p6)
}
  0x26   : > { %s1177_s15 = smov 128   ;;  %s1178_s16 = smov 8  }
  0x27   : > { %945 = dma.hbm_to_vmem [thread:$0]  (!%p1264_p11), %s1477_s1, 2048, %s1257_s28, [#allocation6], %s1177_s15, %s1177_s15, %s1178_s16  }
  0x28   : > { %s1045_s7 = scalar_lea.hbm %s1479_s3, 2048 }
  0x29   : > { %p1046_p1 = scmp.ne.s32.totalorder %s1479_s3, %s1045_s7  ;;  %p1052_p10 = scmp.lt.u32.totalorder %s1045_s7, %s1479_s3 }
  0x2b   : > { %p1048_p2 = pnand %p1046_p1, %p1019_p13 }
  0x2d   : > { %p1049_p6 = pneg %p1048_p2 }
  0x2f   : > { %p1054_p3 = pnand %p1052_p10, %p1049_p6 }
  0x31   : > { %1057 = shalt.err (!%p1054_p3)
}
  0x32   : > { %s1058_s28 = scalar_lea.vmem %s1268_s6, 2048  ;;  %p1066_p12 = scmp.lt.s32.totalorder %s1268_s6, %s1268_s6 }
  0x33   : > { %p1059_p5 = scmp.ne.s32.totalorder %s1268_s6, %s1058_s28  ;;  %p1067_p0 = scmp.lt.s32.totalorder %s1058_s28, %s1058_s28 }
  0x35   : > { %p1061_p7 = pnand %p1059_p5, %p1019_p13  ;;  %p1068_p1 = por %p1067_p0, %p1066_p12 }
  0x37   : > { %p1062_p9 = pneg %p1061_p7 }
  0x39   : > { %p1069_p2 = pnand %p1068_p1, %p1062_p9 }
  0x3b   : > { %1072 = shalt.err (!%p1069_p2)
}
  0x3c   : > { %948 = dma.hbm_to_vmem [thread:$0]  (!%p1264_p11), %s1479_s3, 2048, %s1268_s6, [#allocation6], %s1177_s15, %s1177_s15, %s1178_s16  }
  0x3d   : > { %s1329_s29 = sadd.s32 1, %s1173_s21   ;;  %s29_s14 = sadd.s32 1, %s1169_s20 }
  0x3e   : > { %s26_s17 = ssub.s32 %s1173_s21, %s1329_s29  ;;  %p36_p13 = scmp.ne.s32.totalorder %s1169_s20, %s1165_s19 }
  0x3f   : > { %p27_p6 = scmp.eq.s32.totalorder %s26_s17, 0  ;;  %p37_p10 = scmp.eq.s32.totalorder %s1173_s21, 0 }
  0x40   : > { %p1489_p3 = scmp.eq.s32.totalorder %s1234_s22, 1  ;;  %p959_p7 = scmp.lt.s32.totalorder %s1173_s21, 2 }
  0x41   : > { %s1345_s27 = scalar_select %p27_p6, %s1169_s20, %s29_s14  }
  0x42   : > { %p1339_p5 = por %p1489_p3, %p36_p13  ;;  %p38_p9 = por %p37_p10, %p36_p13 }
  0x43   : > { %s208_s30 = sand.u32 1, %s1169_s20   ;;  %s728_s6 = sshll.u32 %s1173_s21, 10 }
  0x44   : > { %s1490_s23 = scalar_select %p1339_p5, 1, 0 }
  0x45   : > { %s713_s7 = sshll.u32 %s208_s30, 6  ;;  %s1352_s10 = scalar_lea.hbm %s1476_s0, %s728_s6 }
  0x46   : > { %s212_s11 = scalar_lea.vmem [#allocation2], %s713_s7  ;;  %p1356_p11 = pnand %p959_p7, %p38_p9 }
  0x47   : > { %s219_s28 = sshll.u32 %s212_s11, 4  ;;  %s1360_s13 = scalar_lea.sflag [#allocation3], %s208_s30  ;;  %s1354_s28 = int_to_ptr.vmem [resolvable:$true] %s219_s28 }
  0x48   : > { %s1073_s14 = scalar_lea.hbm %s1352_s10, 1024  ;;  %p1075_p0 = pneg %p1356_p11 }
  0x49   : > { %p1074_p12 = scmp.ne.s32.totalorder %s1352_s10, %s1073_s14  ;;  %s1078_s6 = scalar_lea.hbm %s1476_s0, 2048 }
  0x4a   : > { %p1079_p13 = scmp.lt.u32.totalorder %s1352_s10, %s1476_s0  ;;  %p1080_p6 = scmp.lt.u32.totalorder %s1078_s6, %s1073_s14 }
  0x4b   : > { %p1076_p1 = pnand %p1075_p0, %p1074_p12  ;;  %p1082_p3 = scmp.lt.u32.totalorder %s1073_s14, %s1352_s10 }
  0x4c   : > { %p1081_p10 = por %p1080_p6, %p1079_p13 }
  0x4d   : > { %p1077_p2 = pneg %p1076_p1 }
  0x4e   : > { %p1083_p7 = por %p1082_p3, %p1081_p10 }
  0x50   : > { %p1084_p9 = pnand %p1083_p7, %p1077_p2 }
  0x52   : > { %1087 = shalt.err (!%p1084_p9)
}
  0x53   : > { %s1088_s30 = scalar_lea.vmem %s1354_s28, 1024  ;;  %s1179_s11 = smov [#allocation2]  }
  0x54   : > { %p1089_p12 = scmp.ne.s32.totalorder %s1354_s28, %s1088_s30  ;;  %s1093_s17 = sshll.u32 %s1179_s11, 4  ;;  %s1094_s17 = int_to_ptr.vmem [resolvable:$false] %s1093_s17 }
  0x55   : > { %s1095_s7 = scalar_lea.vmem %s1094_s17, 2048  ;;  %p1096_p4 = scmp.lt.s32.totalorder %s1354_s28, %s1094_s17 }
  0x56   : > { %p1091_p1 = pnand %p1089_p12, %p1075_p0  ;;  %p1097_p13 = scmp.lt.s32.totalorder %s1095_s7, %s1088_s30 }
  0x58   : > { %p1092_p5 = pneg %p1091_p1  ;;  %p1098_p6 = por %p1097_p13, %p1096_p4 }
  0x5a   : > { %p1099_p10 = pnand %p1098_p6, %p1092_p5 }
  0x5c   : > { %1102 = shalt.err (!%p1099_p10)
}
  0x5d   : > { %952 = dma.hbm_to_vmem [thread:$0]  (!%p1356_p11), %s1352_s10, 1024, %s1354_s28, %s1360_s13, %s1177_s15, %s1177_s15, %s1178_s16  }
  0x5e   : > { %231 = sbr.rel (%p1253_p8) target bundleno = 762 (0x2fa), region = 40  ;;  %s1394_s14 = sand.u32 (!%p1253_p8), 1, %s1165_s19  }
  0x5f   : > { %s717_s6 = sshll.u32 (!%p1253_p8), %s1394_s14, 6  ;;  %s234_s8 = scalar_lea.sflag (!%p1253_p8), [#allocation3], %s1394_s14 }
  0x60   : > { %s1400_s12 = scalar_lea.vmem (!%p1253_p8), [#allocation2], %s717_s6  ;;  %p1492_p4 = scmp.ne.s32.totalorder (!%p1253_p8), %s1485_s24, 0 }
  0x65   : > { %1148 = dma.done.wait (%p1492_p4), %s234_s8, 1024  }
  0x66   : > { %1150 = vsyncadd (%p1492_p4), %s234_s8, 4294966272  ;;  %p1493_p5 = scmp.eq.s32.totalorder %s1234_s22, 0 }
  0x68   : > { %1152 = dma.done.wait (%p1493_p5), [#allocation6], 4096   ;;  %p1494_p8 = pmov %p1493_p5 }
  0x69   : > { %v282_v0 = vld [vmem:[#allocation5] sm:$0xff]  ;;  %v283_v1 = vld [vmem:[#allocation5 + $0x8] sm:$0xff]  ;;  %v284_v2 = vld [vmem:[#allocation5 + $0x10] sm:$0xff]  ;;  %s271_s10 = scalar_lea.vmem [#allocation8], %s717_s6  ;;  %s729_s28 = sshll.u32 %s1234_s22, 10 }
  0x6a   : > { %1154 = vsyncadd (%p1494_p8), [#allocation6], 4294963200  ;;  %v866_v3 = vpack.c.bf16 %v283_v1, %v282_v0  ;;  %v285_v4 = vld [vmem:[#allocation5 + $0x18] sm:$0xff]  ;;  %v286_v6 = vld [vmem:[#allocation5 + $0x20] sm:$0xff]  ;;  %s616_s13 = sshll.u32 %s271_s10, 4  ;;  %s1430_s11 = scalar_lea.hbm %s1481_s5, %s729_s28  ;;  %s1432_s13 = int_to_ptr.vmem [resolvable:$true] %s616_s13 }
  0x6b   : > { %v870_v5 = vpack.c.bf16 %v285_v4, %v284_v2  ;;  %v287_v7 = vld [vmem:[#allocation5 + $0x28] sm:$0xff]  ;;  %v274_v9 = vld [vmem:[%s1400_s12] sm:$0xff]  ;;  %v288_v10 = vld [vmem:[#allocation5 + $0x30] sm:$0xff]  ;;  %s603_s17 = scalar_lea.sflag [#allocation4], %s1394_s14  ;;  %s1103_s7 = scalar_lea.vmem %s1432_s13, 1024 }
  0x6c   : > { %867 = vmatprep.subr.bf16.mxu0 %v866_v3  ;;  %v874_v8 = vpack.c.bf16 %v287_v7, %v286_v6  ;;  %v289_v11 = vld [vmem:[#allocation5 + $0x38] sm:$0xff]  ;;  %810 = vmatprep.mubr.f32.mxu0 %v274_v9  ;;  %v418_v12 = vld [vmem:[#allocation7] sm:$0xff]  ;;  %v419_v13 = vld [vmem:[#allocation7 + $0x8] sm:$0xff]  ;;  %p1104_p11 = scmp.ne.s32.totalorder %s1432_s13, %s1103_s7  ;;  %p1495_p0 = scmp.ne.s32.totalorder %s1490_s23, 0 }
  0x6d   : > { %869 = vmatpush3.bf16.msra.mxu0 %v866_v3  ;;  %v420_v14 = vld [vmem:[#allocation7 + $0x10] sm:$0xff]  ;;  %v878_v15 = vpack.c.bf16 %v289_v11, %v288_v10  ;;  %v290_v16 = vld [vmem:[#allocation5 + $0x40] sm:$0xff]  ;;  %v898_v17 = vpack.c.bf16 %v419_v13, %v418_v12  ;;  %v421_v18 = vld [vmem:[#allocation7 + $0x18] sm:$0xff]  ;;  %s1180_s22 = smov [#allocation8]  }
  0x6e   : > { %871 = vmatprep.subr.bf16.mxu0 %v870_v5  ;;  %v291_v19 = vld [vmem:[#allocation5 + $0x48] sm:$0xff]  ;;  %v902_v20 = vpack.c.bf16 %v421_v18, %v420_v14  ;;  %v422_v21 = vld [vmem:[#allocation7 + $0x20] sm:$0xff]  ;;  %v292_v24 = vld [vmem:[#allocation5 + $0x50] sm:$0xff]  ;;  %p1105_p2 = pnand %p1104_p11, %p1495_p0  ;;  %s1107_s6 = sshll.u32 %s1180_s22, 4  ;;  %s1108_s6 = int_to_ptr.vmem [resolvable:$false] %s1107_s6 }
  0x6f   : > { %v423_v22 = vld [vmem:[#allocation7 + $0x28] sm:$0xff]  ;;  %899 = vmatprep.subr.bf16.mxu1 %v898_v17  ;;  %v882_v23 = vpack.c.bf16 %v291_v19, %v290_v16  ;;  %v293_v26 = vld [vmem:[#allocation5 + $0x58] sm:$0xff]  ;;  %v424_v27 = vld [vmem:[#allocation7 + $0x30] sm:$0xff]  ;;  %s1109_s8 = scalar_lea.vmem %s1108_s6, 2048  ;;  %p1110_p7 = scmp.lt.s32.totalorder %s1432_s13, %s1108_s6 }
  0x70   : > { %901 = vmatpush3.bf16.msra.mxu1 %v898_v17  ;;  %v906_v25 = vpack.c.bf16 %v423_v22, %v422_v21  ;;  %v425_v28 = vld [vmem:[#allocation7 + $0x38] sm:$0xff]  ;;  %v886_v29 = vpack.c.bf16 %v293_v26, %v292_v24  ;;  %v294_v30 = vld [vmem:[#allocation5 + $0x60] sm:$0xff]  ;;  %v295_v32 = vld [vmem:[#allocation5 + $0x68] sm:$0xff]  ;;  %p1106_p3 = pneg %p1105_p2  ;;  %p1111_p9 = scmp.lt.s32.totalorder %s1109_s8, %s1103_s7 }
  0x71   : > { %873 = vmatpush3.bf16.msra.mxu0 %v870_v5  ;;  %903 = vmatprep.subr.bf16.mxu1 %v902_v20  ;;  %v910_v31 = vpack.c.bf16 %v425_v28, %v424_v27  ;;  %v426_v33 = vld [vmem:[#allocation7 + $0x40] sm:$0xff]  ;;  %v427_v34 = vld [vmem:[#allocation7 + $0x48] sm:$0xff]  ;;  %v890_v35 = vpack.c.bf16 %v295_v32, %v294_v30  ;;  %v296_v36 = vld [vmem:[#allocation5 + $0x70] sm:$0xff] }
  0x72   : > { %875 = vmatprep.subr.bf16.mxu0 %v874_v8  ;;  %v914_v37 = vpack.c.bf16 %v427_v34, %v426_v33  ;;  %v297_v38 = vld [vmem:[#allocation5 + $0x78] sm:$0xff]  ;;  %v428_v39 = vld [vmem:[#allocation7 + $0x50] sm:$0xff]  ;;  %v430_v43 = vld [vmem:[#allocation7 + $0x60] sm:$0xff]  ;;  %p1112_p12 = por %p1111_p9, %p1110_p7 }
  0x73   : > { %v429_v40 = vld [vmem:[#allocation7 + $0x58] sm:$0xff]  ;;  %v894_v41 = vpack.c.bf16 %v297_v38, %v296_v36  ;;  %v431_v44 = vld [vmem:[#allocation7 + $0x68] sm:$0xff]  ;;  %v276_v47 = vld [vmem:[%s1400_s12 + $0x10] sm:$0xff] }
  0x74   : > { %905 = vmatpush3.bf16.msra.mxu1 %v902_v20  ;;  %v918_v42 = vpack.c.bf16 %v429_v40, %v428_v39  ;;  %v922_v45 = vpack.c.bf16 %v431_v44, %v430_v43  ;;  %v275_v46 = vld [vmem:[%s1400_s12 + $0x8] sm:$0xff]  ;;  %v277_v48 = vld [vmem:[%s1400_s12 + $0x18] sm:$0xff]  ;;  %v278_v49 = vld [vmem:[%s1400_s12 + $0x20] sm:$0xff]  ;;  %p1113_p1 = pnand %p1112_p12, %p1106_p3 }
  0x75   : > { %877 = vmatpush3.bf16.msra.mxu0 %v874_v8  ;;  %907 = vmatprep.subr.bf16.mxu1 %v906_v25  ;;  %v279_v50 = vld [vmem:[%s1400_s12 + $0x28] sm:$0xff]  ;;  %v280_v51 = vld [vmem:[%s1400_s12 + $0x30] sm:$0xff]  ;;  %v281_v52 = vld [vmem:[%s1400_s12 + $0x38] sm:$0xff] }
  0x76   : > { %879 = vmatprep.subr.bf16.mxu0 %v878_v15  ;;  %v432_v53 = vld [vmem:[#allocation7 + $0x70] sm:$0xff]  ;;  %v433_v54 = vld [vmem:[#allocation7 + $0x78] sm:$0xff]  ;;  %v721_v56 = vld [vmem:[%s1478_s2] ss:$0 sm:$0xff] }
  0x77   : > { %v926_v55 = vpack.c.bf16 %v433_v54, %v432_v53  ;;  %v722_v17 = vld [vmem:[%s1480_s4] ss:$0 sm:$0xff] }
  0x78   : > { %909 = vmatpush3.bf16.msra.mxu1 %v906_v25 }
  0x79   : > { %881 = vmatpush3.bf16.msra.mxu0 %v878_v15  ;;  %911 = vmatprep.subr.bf16.mxu1 %v910_v31 }
  0x7a   : > { %883 = vmatprep.subr.bf16.mxu0 %v882_v23 }
  0x7c   : > { %913 = vmatpush3.bf16.msra.mxu1 %v910_v31 }
  0x7d   : > { %885 = vmatpush3.bf16.msra.mxu0 %v882_v23  ;;  %915 = vmatprep.subr.bf16.mxu1 %v914_v37 }
  0x7e   : > { %887 = vmatprep.subr.bf16.mxu0 %v886_v29 }
  0x80   : > { %917 = vmatpush3.bf16.msra.mxu1 %v914_v37 }
  0x81   : > { %889 = vmatpush3.bf16.msra.mxu0 %v886_v29  ;;  %919 = vmatprep.subr.bf16.mxu1 %v918_v42 }
  0x82   : > { %891 = vmatprep.subr.bf16.mxu0 %v890_v35 }
  0x84   : > { %921 = vmatpush3.bf16.msra.mxu1 %v918_v42 }
  0x85   : > { %893 = vmatpush3.bf16.msra.mxu0 %v890_v35  ;;  %923 = vmatprep.subr.bf16.mxu1 %v922_v45 }
  0x86   : > { %895 = vmatprep.subr.bf16.mxu0 %v894_v41 }
  0x88   : > { %925 = vmatpush3.bf16.msra.mxu1 %v922_v45 }
  0x89   : > { %897 = vmatpush3.bf16.msra.mxu0 %v894_v41  ;;  %927 = vmatprep.subr.bf16.mxu1 %v926_v55 }
  0x8c   : > { %811 = vmatmul.mubr.f32.vlgmr.msra.gmra.mrb[0].mxu0 %v275_v46  ;;  %929 = vmatpush3.bf16.msra.mxu1 %v926_v55 }
  0x8d   : > { %813 = vmatprep.mubr.f32.mxu0 %v276_v47 }
  0x90   : > { %814 = vmatmul.mubr.f32.gmra.mrb[2].mxu0 %v277_v48 }
  0x91   : > { %816 = vmatprep.mubr.f32.mxu0 %v278_v49 }
  0x94   : > { %817 = vmatmul.mubr.f32.gmra.mrb[4].mxu0 %v279_v50 }
  0x95   : > { %819 = vmatprep.mubr.f32.mxu0 %v280_v51 }
  0x98   : > { %820 = vmatmul.mubr.f32.gmra.mrb[6].mxu0 %v281_v52 }
 0x15f   : > { %v812_v57 = vpop.f32.mrb[0].mxu0 }
 0x160   : > { %v377_v58 = vadd.f32 %v812_v57, %v721_v56  ;;  %v371_v59 = vpop.f32.mrb[1].mxu0 }
 0x161   : > { %v372_v60 = vadd.f32 %v721_v56, %v371_v59 }
 0x162   : > { %v411_v63 = vmax.f32 %v377_v58, 0.0 }
 0x163   : > { %v815_v61 = vpop.f32.mrb[2].mxu0  ;;  %v410_v62 = vmax.f32 %v372_v60, 0.0 }
 0x164   : > { %v387_v0 = vadd.f32 %v815_v61, %v721_v56  ;;  %v381_v1 = vpop.f32.mrb[3].mxu0 }
 0x165   : > { %v382_v2 = vadd.f32 %v721_v56, %v381_v1  ;;  %854 = vmatprep.mubr.f32.mxu1 %v410_v62 }
 0x166   : > { %855 = vmatmul.mubr.f32.vlgmr.msra.gmra.mrb[0].mxu1 %v411_v63  ;;  %v413_v5 = vmax.f32 %v387_v0, 0.0 }
 0x167   : > { %v412_v3 = vmax.f32 %v382_v2, 0.0  ;;  %v818_v4 = vpop.f32.mrb[4].mxu0 }
 0x168   : > { %v397_v6 = vadd.f32 %v818_v4, %v721_v56  ;;  %v391_v7 = vpop.f32.mrb[5].mxu0 }
 0x169   : > { %v392_v8 = vadd.f32 %v721_v56, %v391_v7  ;;  %857 = vmatprep.mubr.f32.mxu1 %v412_v3 }
 0x16a   : > { %v415_v9 = vmax.f32 %v397_v6, 0.0  ;;  %858 = vmatmul.mubr.f32.gmra.mrb[2].mxu1 %v413_v5 }
 0x16b   : > { %v414_v10 = vmax.f32 %v392_v8, 0.0  ;;  %v821_v11 = vpop.f32.mrb[6].mxu0 }
 0x16c   : > { %v407_v12 = vadd.f32 %v821_v11, %v721_v56  ;;  %v401_v13 = vpop.f32.mrb[7].mxu0 }
 0x16d   : > { %v402_v14 = vadd.f32 %v721_v56, %v401_v13  ;;  %860 = vmatprep.mubr.f32.mxu1 %v414_v10 }
 0x16e   : > { %v417_v15 = vmax.f32 %v407_v12, 0.0  ;;  %861 = vmatmul.mubr.f32.gmra.mrb[4].mxu1 %v415_v9 }
 0x16f   : > { %v416_v16 = vmax.f32 %v402_v14, 0.0 }
 0x171   : > { %863 = vmatprep.mubr.f32.mxu1 %v416_v16 }
 0x172   : > { %864 = vmatmul.mubr.f32.gmra.mrb[6].mxu1 %v417_v15 }
 0x239   : > { %v856_v18 = vpop.f32.mrb[0].mxu1 }
 0x23a   : > { %v513_v19 = vadd.f32 %v856_v18, %v722_v17  ;;  %v507_v20 = vpop.f32.mrb[1].mxu1 }
 0x23b   : > { %v508_v21 = vadd.f32 %v722_v17, %v507_v20 }
 0x23c   : > { %v547_v22 = vmul.f32 %v513_v19, %v513_v19 }
 0x23d   : > { %v859_v23 = vpop.f32.mrb[2].mxu1  ;;  %v546_v28 = vmul.f32 %v508_v21, %v508_v21 }
 0x23e   : > { %v523_v24 = vadd.f32 %v859_v23, %v722_v17  ;;  %556 = vadd.xlane.f32.xlu0 %v547_v22  ;;  %v517_v25 = vpop.f32.mrb[3].mxu1 }
 0x23f   : > { %v518_v26 = vadd.f32 %v722_v17, %v517_v25 }
 0x240   : > { %v549_v27 = vmul.f32 %v523_v24, %v523_v24 }
 0x241   : > { %v862_v29 = vpop.f32.mrb[4].mxu1  ;;  %v548_v33 = vmul.f32 %v518_v26, %v518_v26 }
 0x242   : > { %560 = vadd.xlane.f32.xlu1 %v549_v27  ;;  %v527_v30 = vpop.f32.mrb[5].mxu1  ;;  %554 = vadd.xlane.f32.xlu0 %v546_v28  ;;  %v533_v32 = vadd.f32 %v862_v29, %v722_v17 }
 0x243   : > { %v528_v31 = vadd.f32 %v722_v17, %v527_v30 }
 0x244   : > { %v551_v39 = vmul.f32 %v533_v32, %v533_v32 }
 0x245   : > { %v865_v34 = vpop.f32.mrb[6].mxu1  ;;  %v550_v35 = vmul.f32 %v528_v31, %v528_v31 }
 0x246   : > { %v537_v36 = vpop.f32.mrb[7].mxu1  ;;  %558 = vadd.xlane.f32.xlu1 %v548_v33  ;;  %v543_v38 = vadd.f32 %v865_v34, %v722_v17 }
 0x247   : > { %v538_v37 = vadd.f32 %v722_v17, %v537_v36  ;;  %562 = vadd.xlane.f32.xlu0 %v550_v35 }
 0x248   : > { %v553_v41 = vmul.f32 %v543_v38, %v543_v38 }
 0x249   : > { %v552_v40 = vmul.f32 %v538_v37, %v538_v37 }
 0x24a   : > { %564 = vadd.xlane.f32.xlu1 %v551_v39 }
 0x24b   : > { %566 = vadd.xlane.f32.xlu0 %v552_v40 }
 0x24e   : > { %568 = vadd.xlane.f32.xlu1 %v553_v41 }
 0x2cb   : > { %v557_v42 = vpop.xlane.xlu0 %556 }
 0x2cc   : > { %v571_v43 = vmax.f32 %v557_v42, 1e-24 }
 0x2ce   : > { %1001 = vrsqrt.f32 %v571_v43 }
 0x2cf   : > { %v561_v44 = vpop.xlane.xlu1 %560  ;;  %v555_v45 = vpop.xlane.xlu0 %554 }
 0x2d0   : > { %v573_v46 = vmax.f32 %v561_v44, 1e-24  ;;  %v570_v47 = vmax.f32 %v555_v45, 1e-24 }
 0x2d2   : > { %1003 = vrsqrt.f32 %v573_v46 }
 0x2d3   : > { %1005 = vrsqrt.f32 %v570_v47  ;;  %v559_v48 = vpop.xlane.xlu1 %558 }
 0x2d4   : > { %v572_v49 = vmax.f32 %v559_v48, 1e-24  ;;  %v563_v50 = vpop.xlane.xlu0 %562 }
 0x2d5   : > { %v574_v51 = vmax.f32 %v563_v50, 1e-24 }
 0x2d6   : > { %1007 = vrsqrt.f32 %v572_v49 }
 0x2d7   : > { %1009 = vrsqrt.f32 %v574_v51  ;;  %v565_v52 = vpop.xlane.xlu1 %564 }
 0x2d8   : > { %v1002_v53 = vpop.eup %1001  ;;  %v575_v54 = vmax.f32 %v565_v52, 1e-24  ;;  %v567_v55 = vpop.xlane.xlu0 %566 }
 0x2d9   : > { %v587_v56 = vmul.f32 %v1002_v53, %v513_v19  ;;  %v576_v57 = vmax.f32 %v567_v55, 1e-24 }
 0x2da   : > { %1011 = vrsqrt.f32 %v575_v54 }
 0x2db   : > { %595 = vst [vmem:[%s271_s10 + $0x8] sm:$0xff] %v587_v56  ;;  %1013 = vrsqrt.f32 %v576_v57  ;;  %v569_v58 = vpop.xlane.xlu1 %568 }
 0x2dc   : > { %v1004_v59 = vpop.eup %1003  ;;  %v577_v60 = vmax.f32 %v569_v58, 1e-24 }
 0x2dd   : > { %v1006_v61 = vpop.eup %1005  ;;  %v589_v62 = vmul.f32 %v1004_v59, %v523_v24 }
 0x2de   : > { %v586_v63 = vmul.f32 %v1006_v61, %v508_v21  ;;  %1015 = vrsqrt.f32 %v577_v60 }
 0x2df   : > { %597 = vst [vmem:[%s271_s10 + $0x18] sm:$0xff] %v589_v62 }
 0x2e0   : > { %v1008_v0 = vpop.eup %1007  ;;  %594 = vst [vmem:[%s271_s10] sm:$0xff] %v586_v63 }
 0x2e1   : > { %v1010_v1 = vpop.eup %1009  ;;  %v588_v2 = vmul.f32 %v1008_v0, %v518_v26 }
 0x2e2   : > { %v590_v3 = vmul.f32 %v1010_v1, %v528_v31 }
 0x2e3   : > { %596 = vst [vmem:[%s271_s10 + $0x10] sm:$0xff] %v588_v2 }
 0x2e4   : > { %v1012_v4 = vpop.eup %1011  ;;  %598 = vst [vmem:[%s271_s10 + $0x20] sm:$0xff] %v590_v3 }
 0x2e5   : > { %v1014_v5 = vpop.eup %1013  ;;  %v591_v6 = vmul.f32 %v1012_v4, %v533_v32 }
 0x2e6   : > { %v592_v7 = vmul.f32 %v1014_v5, %v538_v37 }
 0x2e7   : > { %599 = vst [vmem:[%s271_s10 + $0x28] sm:$0xff] %v591_v6 }
 0x2e8   : > { %v1016_v8 = vpop.eup %1015  ;;  %600 = vst [vmem:[%s271_s10 + $0x30] sm:$0xff] %v592_v7 }
 0x2e9   : > { %v593_v9 = vmul.f32 %v1016_v8, %v543_v38 }
 0x2eb   : > { %601 = vst [vmem:[%s271_s10 + $0x38] sm:$0xff] %v593_v9 }
 0x2ec   : > { %1116 = shalt.err (!%p1113_p1)
}
 0x2ed   : > { %s1117_s12 = scalar_lea.hbm %s1430_s11, 1024  ;;  %s1121_s15 = scalar_lea.hbm %s1481_s5, 2048 }
 0x2ee   : > { %p1118_p13 = scmp.ne.s32.totalorder %s1430_s11, %s1117_s12  ;;  %p1122_p4 = scmp.lt.u32.totalorder %s1430_s11, %s1481_s5 }
 0x2ef   : > { %p1123_p5 = scmp.lt.u32.totalorder %s1121_s15, %s1117_s12  ;;  %p1125_p11 = scmp.lt.u32.totalorder %s1117_s12, %s1430_s11 }
 0x2f0   : > { %p1119_p6 = pnand %p1118_p13, %p1495_p0 }
 0x2f1   : > { %p1124_p8 = por %p1123_p5, %p1122_p4 }
 0x2f2   : > { %p1120_p10 = pneg %p1119_p6 }
 0x2f3   : > { %p1126_p2 = por %p1125_p11, %p1124_p8 }
 0x2f5   : > { %p1127_p3 = pnand %p1126_p2, %p1120_p10 }
 0x2f7   : > { %1130 = shalt.err (!%p1127_p3)
}
 0x2f8   : > { %s1181_s28 = smov 128   ;;  %s1182_s9 = smov 8  }
 0x2f9   : > { %940 = dma.vmem_to_hbm [thread:$0]  (%p1495_p0), %s1432_s13, 1024, %s1430_s11, %s603_s17, %s1181_s28, %s1181_s28, %s1182_s9  }
 0x2fa PF: > { %s631_s30 = sand.u32 1, %s1161_s18   ;;  %p1496_p7 = scmp.ne.s32.totalorder %s1486_s25, 0 }
 0x2fb   : > { %p1497_p9 = scmp.ge.s32.totalorder %s1173_s21, 2  ;;  %s632_s7 = scalar_lea.sflag [#allocation4], %s631_s30 }
 0x2fd   : > { %p954_p12 = pnand %p1497_p9, %p1496_p7 }
 0x2ff   : > { %1156 = dma.done.wait (!%p954_p12), %s632_s7, 1024  }
 0x300   : > { %1158 = vsyncadd (!%p954_p12), %s632_s7, 4294966272  ;;  %p19_p1 = scmp.ge.s32.totalorder %s1329_s29, 4   ;;  %s1498_s18 = smov %s1165_s19 }
 0x301   : > { %s1499_s19 = smov %s1169_s20  ;;  %s1500_s20 = smov %s1345_s27 }
 0x302   : > { %s1501_s21 = smov %s1329_s29  ;;  %21 = sbr.rel (!%p19_p1) target bundleno = 6 (0x6), region = 93 }
 0x309   :  { %637 = vsyncpa [#allocation3], 1 }
 0x30a   :  { %639 = vsyncpa [#allocation3 + $0x1], 1 }
 0x30b   :  { %640 = vsyncpa [#allocation6], 1 }
 0x30c   :  { %641 = vsyncpa [#allocation4], 1 }
 0x30d   :  { %643 = vsyncpa [#allocation4 + $0x1], 1 }

</bundles_post_ra>
